<compile_context>
chip_gen: v6e
topology: v6e:2x2x1
jax: 0.10.0
libtpu: 0.0.40
codegen_flags: <defaults>
</compile_context>

<pallas_src>
import functools

import jax
import jax.numpy as jnp
from jax.experimental import pallas as pl
from jax.experimental.pallas import tpu as pltpu


def _round_up(x: int, m: int) -> int:
    return (x + m - 1) // m * m


def _fused_mlp_kernel(x_ref, *refs, n_layers: int, final_activation: bool):
    """refs = (w_0, b_0, w_1, b_1, ..., w_{L-1}, b_{L-1}, o_ref).

    Transposed ("batch on lanes") layout:
      x_ref : (F_in,  tm)   activations; batch rides the 128-lane axis
      w_i   : (F_out, F_in) PyTorch-native Linear weight
      b_i   : (F_out, 1)    broadcasts across the lane (batch) axis
      o_ref : (F_out, tm)
    """
    o_ref = refs[-1]
    h = x_ref[...].astype(jnp.float32)
    for li in range(n_layers):
        w = refs[2 * li][...]
        b = refs[2 * li + 1][...]
        # MXU matmul with f32 accumulate; N-dim == tm (lane-dense in the tiled
        # case). Bias add + LeakyReLU stay on the VPU (free slots under MXU).
        h = jnp.dot(w, h, preferred_element_type=jnp.float32) + b
        if (li != n_layers - 1) or final_activation:
            h = jnp.where(h > 0, h, 0.1 * h)  # LeakyReLU(negative_slope=0.1)
    o_ref[...] = h.astype(o_ref.dtype)


def mlp_forward(x, params, final_activation: bool = False):
    """Fused Pallas MLP forward.

    x: (M, F_in) row-major (PyTorch layout).
    params: [(W_i, b_i)] with W_i: (F_out_i, F_in_i) (PyTorch nn.Linear native),
            b_i: (F_out_i, 1).
    """
    n_layers = len(params)
    M, F_in = x.shape
    F_out = params[-1][0].shape[0]

    # Batch-on-lanes layout: (F_in, M). The tiny feature dims (8..32) sit on the
    # sublane axis; the batch fills the 128-lane axis.
    x_t = x.T

    # Batch tile on the lane axis: multiple of 128, or the full batch if small.
    if M <= 128:
        tm = M
    else:
        # >=2 grid steps so both v7x TensorCores get work; large tiles amortize
        # the ~0.35us per-grid-step overhead (measured 63% -> 85%+ of roofline
        # going 256 -> 512/1024 on mem-bound tiles).
        tm = min(2048, _round_up(pl.cdiv(M, 2), 128))

    # Explicit VMEM budget: resident weights + double-buffered in/out tiles +
    # f32 activation working set must fit the scoped limit on every generation
    # (v7x physical VMEM is only 64 MiB). Shrink tm if the MLP ever grows.
    param_bytes = sum(
        w.size * w.dtype.itemsize + b.size * b.dtype.itemsize for w, b in params
    )
    widest = max(max(w.shape) for w, _ in params)

    def _tile_bytes(t):
        return 4 * t * (2 * F_in + 2 * F_out + 2 * widest)

    vmem_budget = 16 << 20  # conservative: under the scoped default everywhere
    while tm > 128 and param_bytes + _tile_bytes(tm) > vmem_budget:
        tm //= 2

    grid = (pl.cdiv(M, tm),)

    # Flatten params into the pallas_call argument list; weights/biases are
    # full-array blocks, VMEM-resident across the whole batch grid.
    flat_args, flat_specs = [], []
    for w, b in params:
        flat_args += [w, b]
        flat_specs += [
            pl.BlockSpec(w.shape, lambda i: (0, 0)),
            pl.BlockSpec(b.shape, lambda i: (0, 0)),
        ]

    # Advisory cost estimate (true M, no padded rows).
    flops = sum(2 * M * w.shape[0] * w.shape[1] for w, _ in params)
    bytes_accessed = (
        x.size * x.dtype.itemsize + param_bytes + M * F_out * x.dtype.itemsize
    )

    kernel = functools.partial(
        _fused_mlp_kernel, n_layers=n_layers, final_activation=final_activation
    )

    out_t = pl.pallas_call(
        kernel,
        out_shape=jax.ShapeDtypeStruct((F_out, M), x.dtype),
        grid=grid,
        in_specs=[pl.BlockSpec((F_in, tm), lambda i: (0, i))] + flat_specs,
        out_specs=pl.BlockSpec((F_out, tm), lambda i: (0, i)),
        compiler_params=pltpu.CompilerParams(
            dimension_semantics=("parallel",),
            vmem_limit_bytes=32 * 1024 * 1024,
        ),
        cost_estimate=pl.CostEstimate(
            flops=flops, transcendentals=0, bytes_accessed=bytes_accessed
        ),
    )(x_t, *flat_args)

    return out_t.T  # back to (M, F_out)


def init_mlp_params(key, layers_size):
    """Deterministic PyTorch-nn.Linear-style init, native (F_out, F_in) layout."""
    params = []
    for li in range(1, len(layers_size)):
        fan_in, fan_out = layers_size[li - 1], layers_size[li]
        key, kw, kb = jax.random.split(key, 3)
        bound = 1.0 / jnp.sqrt(jnp.float32(fan_in))
        w = jax.random.uniform(kw, (fan_out, fan_in), jnp.float32, -bound, bound)
        b = jax.random.uniform(kb, (fan_out, 1), jnp.float32, -bound, bound)
        params.append((w, b))
    return params


def mlp_reference(x, params, final_activation=False):
    n_layers = len(params)
    for li, (w, b) in enumerate(params):
        x = x @ w.T + b.reshape(1, -1)
        if (li != n_layers - 1) or final_activation:
            x = jnp.where(x > 0, x, 0.1 * x)
    return x


if __name__ == "__main__":
    key = jax.random.PRNGKey(0)
    layers_size = [16, 32, 32, 8]  # MLP([16, 32, 32, 8])
    batch = 8

    key, kx = jax.random.split(key)
    x = jax.random.normal(kx, (batch, layers_size[0]), dtype=jnp.float32)
    params = init_mlp_params(key, layers_size)

    out = mlp_forward(x, params, final_activation=False)
    out = jax.block_until_ready(out)

    ref = mlp_reference(x, params, final_activation=False)
    assert out.shape == (batch, layers_size[-1])
    assert jnp.allclose(out, ref, atol=1e-4, rtol=1e-4)

    print("KERNEL_OK")
</pallas_src>

<mosaic_0001>
module attributes {stable_mosaic.version = 11 : i64} {
  func.func @_fused_mlp_kernel(%arg0: i32, %arg1: memref<16x8xf32, #tpu.memory_space<vmem>>, %arg2: memref<32x16xf32, #tpu.memory_space<vmem>>, %arg3: memref<32x1xf32, #tpu.memory_space<vmem>>, %arg4: memref<32x32xf32, #tpu.memory_space<vmem>>, %arg5: memref<32x1xf32, #tpu.memory_space<vmem>>, %arg6: memref<8x32xf32, #tpu.memory_space<vmem>>, %arg7: memref<8x1xf32, #tpu.memory_space<vmem>>, %arg8: memref<8x8xf32, #tpu.memory_space<vmem>>) attributes {dimension_semantics = [#tpu.dimension_semantics<parallel>], iteration_bounds = array<i64: 1>, scalar_prefetch = 0 : i64, scratch_operands = 0 : i64, tpu.core_type = #tpu.core_type<tc>, window_params = [{transform_indices = @transform_0, window_bounds = array<i64: 16, 8>}, {pipeline_mode = #tpu.pipeline_mode<synchronous>, transform_indices = @transform_1, window_bounds = array<i64: 32, 16>}, {pipeline_mode = #tpu.pipeline_mode<synchronous>, transform_indices = @transform_2, window_bounds = array<i64: 32, 1>}, {pipeline_mode = #tpu.pipeline_mode<synchronous>, transform_indices = @transform_3, window_bounds = array<i64: 32, 32>}, {pipeline_mode = #tpu.pipeline_mode<synchronous>, transform_indices = @transform_4, window_bounds = array<i64: 32, 1>}, {pipeline_mode = #tpu.pipeline_mode<synchronous>, transform_indices = @transform_5, window_bounds = array<i64: 8, 32>}, {pipeline_mode = #tpu.pipeline_mode<synchronous>, transform_indices = @transform_6, window_bounds = array<i64: 8, 1>}, {transform_indices = @transform_7, window_bounds = array<i64: 8, 8>}]} {
    %c0 = arith.constant 0 : index
    %c0_0 = arith.constant 0 : index
    %0 = vector.load %arg1[%c0, %c0_0] : memref<16x8xf32, #tpu.memory_space<vmem>>, vector<16x8xf32>
    %c0_1 = arith.constant 0 : index
    %c0_2 = arith.constant 0 : index
    %1 = vector.load %arg2[%c0_1, %c0_2] : memref<32x16xf32, #tpu.memory_space<vmem>>, vector<32x16xf32>
    %c0_3 = arith.constant 0 : index
    %c0_4 = arith.constant 0 : index
    %2 = vector.load %arg3[%c0_3, %c0_4] : memref<32x1xf32, #tpu.memory_space<vmem>>, vector<32x1xf32>
    %cst = arith.constant dense<0.000000e+00> : vector<32x8xf32>
    %3 = tpu.matmul %1, %0, %cst {dimension_numbers = #tpu.dot_dimension_numbers<[1], [0], [0], [1], [0, 0, 1, 1], [], []>} : vector<32x16xf32>, vector<16x8xf32>, vector<32x8xf32> -> vector<32x8xf32>
    %4 = vector.broadcast %2 : vector<32x1xf32> to vector<32x8xf32>
    %5 = arith.addf %3, %4 : vector<32x8xf32>
    %cst_5 = arith.constant 0.000000e+00 : f32
    %6 = vector.broadcast %cst_5 : f32 to vector<32x8xf32>
    %7 = arith.cmpf ogt, %5, %6 : vector<32x8xf32>
    %cst_6 = arith.constant 1.000000e-01 : f32
    %8 = vector.broadcast %cst_6 : f32 to vector<32x8xf32>
    %9 = arith.mulf %8, %5 : vector<32x8xf32>
    %10 = arith.select %7, %5, %9 : vector<32x8xi1>, vector<32x8xf32>
    %c0_7 = arith.constant 0 : index
    %c0_8 = arith.constant 0 : index
    %11 = vector.load %arg4[%c0_7, %c0_8] : memref<32x32xf32, #tpu.memory_space<vmem>>, vector<32x32xf32>
    %c0_9 = arith.constant 0 : index
    %c0_10 = arith.constant 0 : index
    %12 = vector.load %arg5[%c0_9, %c0_10] : memref<32x1xf32, #tpu.memory_space<vmem>>, vector<32x1xf32>
    %cst_11 = arith.constant dense<0.000000e+00> : vector<32x8xf32>
    %13 = tpu.matmul %11, %10, %cst_11 {dimension_numbers = #tpu.dot_dimension_numbers<[1], [0], [0], [1], [0, 0, 1, 1], [], []>} : vector<32x32xf32>, vector<32x8xf32>, vector<32x8xf32> -> vector<32x8xf32>
    %14 = vector.broadcast %12 : vector<32x1xf32> to vector<32x8xf32>
    %15 = arith.addf %13, %14 : vector<32x8xf32>
    %cst_12 = arith.constant 0.000000e+00 : f32
    %16 = vector.broadcast %cst_12 : f32 to vector<32x8xf32>
    %17 = arith.cmpf ogt, %15, %16 : vector<32x8xf32>
    %cst_13 = arith.constant 1.000000e-01 : f32
    %18 = vector.broadcast %cst_13 : f32 to vector<32x8xf32>
    %19 = arith.mulf %18, %15 : vector<32x8xf32>
    %20 = arith.select %17, %15, %19 : vector<32x8xi1>, vector<32x8xf32>
    %c0_14 = arith.constant 0 : index
    %c0_15 = arith.constant 0 : index
    %21 = vector.load %arg6[%c0_14, %c0_15] : memref<8x32xf32, #tpu.memory_space<vmem>>, vector<8x32xf32>
    %c0_16 = arith.constant 0 : index
    %c0_17 = arith.constant 0 : index
    %22 = vector.load %arg7[%c0_16, %c0_17] : memref<8x1xf32, #tpu.memory_space<vmem>>, vector<8x1xf32>
    %cst_18 = arith.constant dense<0.000000e+00> : vector<8x8xf32>
    %23 = tpu.matmul %21, %20, %cst_18 {dimension_numbers = #tpu.dot_dimension_numbers<[1], [0], [0], [1], [0, 0, 1, 1], [], []>} : vector<8x32xf32>, vector<32x8xf32>, vector<8x8xf32> -> vector<8x8xf32>
    %24 = vector.broadcast %22 : vector<8x1xf32> to vector<8x8xf32>
    %25 = arith.addf %23, %24 : vector<8x8xf32>
    %c0_19 = arith.constant 0 : index
    %c0_20 = arith.constant 0 : index
    %26 = vector.load %arg8[%c0_19, %c0_20] : memref<8x8xf32, #tpu.memory_space<vmem>>, vector<8x8xf32>
    tpu.vector_store %arg8[%c0_19, %c0_20], %25 {strides = array<i32>} : memref<8x8xf32, #tpu.memory_space<vmem>>, vector<8x8xf32>,
    return
  }
  func.func @transform_0(%arg0: i32) -> (i32, i32) {
    %c0_i32 = arith.constant 0 : i32
    %c0_i32_0 = arith.constant 0 : i32
    return %c0_i32, %arg0 : i32, i32
  }
  func.func @transform_1(%arg0: i32) -> (i32, i32) {
    %c0_i32 = arith.constant 0 : i32
    %c0_i32_0 = arith.constant 0 : i32
    %c0_i32_1 = arith.constant 0 : i32
    return %c0_i32, %c0_i32_0 : i32, i32
  }
  func.func @transform_2(%arg0: i32) -> (i32, i32) {
    %c0_i32 = arith.constant 0 : i32
    %c0_i32_0 = arith.constant 0 : i32
    %c0_i32_1 = arith.constant 0 : i32
    return %c0_i32, %c0_i32_0 : i32, i32
  }
  func.func @transform_3(%arg0: i32) -> (i32, i32) {
    %c0_i32 = arith.constant 0 : i32
    %c0_i32_0 = arith.constant 0 : i32
    %c0_i32_1 = arith.constant 0 : i32
    return %c0_i32, %c0_i32_0 : i32, i32
  }
  func.func @transform_4(%arg0: i32) -> (i32, i32) {
    %c0_i32 = arith.constant 0 : i32
    %c0_i32_0 = arith.constant 0 : i32
    %c0_i32_1 = arith.constant 0 : i32
    return %c0_i32, %c0_i32_0 : i32, i32
  }
  func.func @transform_5(%arg0: i32) -> (i32, i32) {
    %c0_i32 = arith.constant 0 : i32
    %c0_i32_0 = arith.constant 0 : i32
    %c0_i32_1 = arith.constant 0 : i32
    return %c0_i32, %c0_i32_0 : i32, i32
  }
  func.func @transform_6(%arg0: i32) -> (i32, i32) {
    %c0_i32 = arith.constant 0 : i32
    %c0_i32_0 = arith.constant 0 : i32
    %c0_i32_1 = arith.constant 0 : i32
    return %c0_i32, %c0_i32_0 : i32, i32
  }
  func.func @transform_7(%arg0: i32) -> (i32, i32) {
    %c0_i32 = arith.constant 0 : i32
    %c0_i32_0 = arith.constant 0 : i32
    return %c0_i32, %arg0 : i32, i32
  }
}

</mosaic_0001>

<bundles_post_ra>
// kernel: tpu_custom_call.1
= control target key start
LH: loop header
LB: loop body
LE: loop exit
PB: predicated region body
PF: predicated region fallthrough
CT: control target
= control target key end

     0   :  { %vm57_vm0 = vcmask 130048   ;;  %v492_v4 = vmov 0   ;;  %s608_s0 = inlined_call_operand.vmem [shape: f32[16,8], index: 0, kind: input, shape index: {}]   ;;  %s609_s1 = inlined_call_operand.vmem [shape: f32[32,16], index: 1, kind: input, shape index: {}]   ;;  %s610_s2 = inlined_call_operand.vmem [shape: f32[32,1], index: 2, kind: input, shape index: {}]   ;;  %s611_s3 = inlined_call_operand.vmem [shape: f32[32,32], index: 3, kind: input, shape index: {}]   ;;  %s612_s4 = inlined_call_operand.vmem [shape: f32[32,1], index: 4, kind: input, shape index: {}]   ;;  %s613_s5 = inlined_call_operand.vmem [shape: f32[8,32], index: 5, kind: input, shape index: {}]   ;;  %s614_s6 = inlined_call_operand.vmem [shape: f32[8,1], index: 6, kind: input, shape index: {}]   ;;  %s615_s7 = inlined_call_operand.hbm [shape: f32[8,8], index: 7, kind: output, shape index: {}]  }
   0x1   :  { %v28_v0 = vld [vmem:[%s608_s0 + $0x8] sm:$0xff]  ;;  %v27_v1 = vld [vmem:[%s608_s0] sm:$0xff]  ;;  %468 = vset.pattern.permute.xlu0 %v492_v4  ;;  %v36_v5 = vld [vmem:[%s610_s2 + $0x18] sm:$0xff]  ;;  %469 = vset.pattern.permute.xlu1 %v492_v4 }
   0x2   :  { %v29_v2 = vld [vmem:[%s609_s1] sm:$0xff]  ;;  %429 = vmatprep.subr.mxu0 %v28_v0  ;;  %v30_v3 = vld [vmem:[%s609_s1 + $0x8] sm:$0xff]  ;;  %v31_v6 = vld [vmem:[%s609_s1 + $0x10] sm:$0xff]  ;;  %54 = vperm.xlu0 %468, %v36_v5  }
   0x3   :  { %433 = vmatprep.mubr.msk.f32.mxu0 %vm57_vm0, %v29_v2  ;;  %430 = vmatpush3.msra.mxu0 %v28_v0  ;;  %v34_v7 = vld [vmem:[%s610_s2 + $0x8] sm:$0xff]  ;;  %v35_v8 = vld [vmem:[%s610_s2 + $0x10] sm:$0xff] }
   0x4   :  { %431 = vmatprep.subr.mxu0 %v27_v1  ;;  %44 = vperm.xlu1 %469, %v34_v7  }
   0x5   :  { %432 = vmatpush3.msra.mxu0 %v27_v1 }
   0x6   :  { %434 = vmatmul.mubr.msk.f32.vlgmr.msra.gmra.mxu0 %vm57_vm0, %v30_v3 }
   0x7   :  { %12 = vsyncpa [#allocation3], 0  ;;  %436 = vmatprep.mubr.msk.f32.mxu0 %vm57_vm0, %v31_v6  ;;  %v32_v9 = vld [vmem:[%s609_s1 + $0x18] sm:$0xff]  ;;  %v33_v10 = vld [vmem:[%s610_s2] sm:$0xff]  ;;  %49 = vperm.xlu0 %468, %v35_v8   ;;  %vm195_vm1 = vcmask 261120   ;;  %v493_v40 = vmov 0.0  }
   0x8   :  { %v174_v11 = vld [vmem:[%s612_s4 + $0x18] sm:$0xff]  ;;  %39 = vperm.xlu1 %469, %v33_v10   ;;  %v173_v12 = vld [vmem:[%s612_s4 + $0x10] sm:$0xff]  ;;  %v172_v13 = vld [vmem:[%s612_s4 + $0x8] sm:$0xff]  ;;  %453 = vmatprep.subr.mxu0 %v493_v40  ;;  %vm494_vm6 = vmmov 0   ;;  %s495_s11 = smov [#allocation2]   ;;  %vm385_vm11 = vcmask 64512  }
   0x9   :  { %v171_v14 = vld [vmem:[%s612_s4] sm:$0xff]  ;;  %v168_v37 = vld [vmem:[%s611_s3 + $0x8] sm:$0xff]  ;;  %v169_v38 = vld [vmem:[%s611_s3 + $0x10] sm:$0xff]  ;;  %s393_s12 = sshll.u32 %s495_s11, 4  ;;  %s394_s12 = int_to_ptr.vmem [resolvable:$true] %s393_s12 }
   0xa   :  { %437 = vmatmul.mubr.msk.f32.gmra.mxu0 %vm57_vm0, %v32_v9  ;;  %v306_v15 = vld [vmem:[%s614_s6] sm:$0xff]  ;;  %v170_v39 = vld [vmem:[%s611_s3 + $0x18] sm:$0xff]  ;;  %s470_s13 = scalar_lea.vmem %s394_s12, 128  ;;  %p475_p1 = scmp.lt.s32.totalorder %s394_s12, %s394_s12 }
   0xb   :  { %192 = vperm.xlu0 %468, %v174_v11   ;;  %v167_v16 = vld [vmem:[%s611_s3] sm:$0xff]  ;;  %461 = vmatprep.mubr.msk.f32.mxu0 %vm494_vm6, %v493_v40  ;;  %p471_p0 = scmp.ne.s32.totalorder %s394_s12, %s470_s13  ;;  %p476_p2 = scmp.lt.s32.totalorder %s470_s13, %s470_s13 }
   0xc   :  { %187 = vperm.xlu1 %469, %v173_v12   ;;  %447 = vmatprep.mubr.msk.f32.mxu1 %vm195_vm1, %v167_v16  ;;  %v305_v60 = vld [vmem:[%s613_s5] sm:$0xff] }
   0xd   :  { %p477_p3 = por %p476_p2, %p475_p1 }
   0xf   :  { %182 = vperm.xlu0 %468, %v172_v13   ;;  %p478_p4 = pnand %p477_p3, %p471_p0 }
  0x10   :  { %177 = vperm.xlu1 %469, %v171_v14  }
  0x13   :  { %309 = vperm.xlu0 %468, %v306_v15  }
  0x7d   :  { %v55_v17 = vpop.permute.xlu0 %54 }
  0x7f   :  { %v45_v18 = vpop.permute.xlu1 %44 }
  0x82   :  { %v50_v22 = vpop.permute.xlu0 %49 }
  0x83   :  { %v40_v25 = vpop.permute.xlu1 %39 }
  0x86   :  { %v193_v41 = vpop.permute.xlu0 %192 }
  0x87   :  { %v188_v42 = vpop.permute.xlu1 %187 }
  0x8a   :  { %v183_v45 = vpop.permute.xlu0 %182 }
  0x8b   :  { %v178_v49 = vpop.permute.xlu1 %177 }
  0x8e   :  { %v310_v62 = vpop.permute.xlu0 %309 }
  0xc6   :  { %v435_v19 = vpop.f32.mrf.mxu0 }
  0xc7   :  { %v142_v23 = vadd.f32 %v435_v19, %v45_v18 }
  0xc8   :  { %v136_v20 = vpop.f32.mrf.mxu0 }
  0xc9   :  { %v137_v27 = vadd.f32 %v136_v20, %v40_v25  ;;  %v160_v30 = vmul.f32 0.1, %v142_v23  ;;  %vm156_vm4 = vcmp.gt.f32.partialorder %v142_v23, 0.0 }
  0xca   :  { %v438_v21 = vpop.f32.mrf.mxu0 }
  0xcb   :  { %v152_v24 = vadd.f32 %v438_v21, %v55_v17  ;;  %v159_v33 = vmul.f32 0.1, %v137_v27  ;;  %vm155_vm5 = vcmp.gt.f32.partialorder %v137_v27, 0.0  ;;  %v164_v35 = vsel %vm156_vm4, %v142_v23, %v160_v30 }
  0xcc   :  { %v146_v26 = vpop.f32.mrf.mxu0 }
  0xcd   :  { %v147_v28 = vadd.f32 %v146_v26, %v50_v22  ;;  %vm158_vm2 = vcmp.gt.f32.partialorder %v152_v24, 0.0  ;;  %v162_v29 = vmul.f32 0.1, %v152_v24  ;;  %v163_v36 = vsel %vm155_vm5, %v137_v27, %v159_v33 }
  0xcf   :  { %v161_v31 = vmul.f32 0.1, %v147_v28  ;;  %v166_v32 = vsel %vm158_vm2, %v152_v24, %v162_v29  ;;  %vm157_vm3 = vcmp.gt.f32.partialorder %v147_v28, 0.0 }
  0xd0   :  { %439 = vmatprep.subr.mxu1 %v166_v32 }
  0xd1   :  { %440 = vmatpush3.msra.mxu1 %v166_v32  ;;  %v165_v34 = vsel %vm157_vm3, %v147_v28, %v161_v31 }
  0xd2   :  { %441 = vmatprep.subr.mxu1 %v165_v34 }
  0xd3   :  { %442 = vmatpush3.msra.mxu1 %v165_v34 }
  0xd4   :  { %443 = vmatprep.subr.mxu1 %v164_v35 }
  0xd5   :  { %444 = vmatpush3.msra.mxu1 %v164_v35 }
  0xd6   :  { %445 = vmatprep.subr.mxu1 %v163_v36 }
  0xd7   :  { %446 = vmatpush3.msra.mxu1 %v163_v36 }
  0xd8   :  { %448 = vmatmul.mubr.msk.f32.vlgmr.msra.gmra.mxu1 %vm195_vm1, %v168_v37 }
  0xd9   :  { %450 = vmatprep.mubr.msk.f32.mxu1 %vm195_vm1, %v169_v38 }
  0xdc   :  { %451 = vmatmul.mubr.msk.f32.gmra.mxu1 %vm195_vm1, %v170_v39 }
 0x198   :  { %v449_v43 = vpop.f32.mrf.mxu1 }
 0x199   :  { %v280_v47 = vadd.f32 %v449_v43, %v183_v45 }
 0x19a   :  { %v274_v44 = vpop.f32.mrf.mxu1 }
 0x19b   :  { %v275_v51 = vadd.f32 %v274_v44, %v178_v49  ;;  %v298_v54 = vmul.f32 0.1, %v280_v47  ;;  %vm294_vm9 = vcmp.gt.f32.partialorder %v280_v47, 0.0 }
 0x19c   :  { %v452_v46 = vpop.f32.mrf.mxu1 }
 0x19d   :  { %v290_v48 = vadd.f32 %v452_v46, %v193_v41  ;;  %v297_v57 = vmul.f32 0.1, %v275_v51  ;;  %vm293_vm10 = vcmp.gt.f32.partialorder %v275_v51, 0.0  ;;  %v302_v59 = vsel %vm294_vm9, %v280_v47, %v298_v54 }
 0x19e   :  { %v284_v50 = vpop.f32.mrf.mxu1 }
 0x19f   :  { %vm296_vm7 = vcmp.gt.f32.partialorder %v290_v48, 0.0  ;;  %v300_v52 = vmul.f32 0.1, %v290_v48  ;;  %v285_v53 = vadd.f32 %v284_v50, %v188_v42  ;;  %v301_v61 = vsel %vm293_vm10, %v275_v51, %v297_v57 }
 0x1a1   :  { %vm295_vm8 = vcmp.gt.f32.partialorder %v285_v53, 0.0  ;;  %v299_v55 = vmul.f32 0.1, %v285_v53  ;;  %v304_v56 = vsel %vm296_vm7, %v290_v48, %v300_v52 }
 0x1a2   :  { %454 = vmatpush3.msra.mxu0 %v304_v56 }
 0x1a3   :  { %455 = vmatprep.subr.mxu0 %v493_v40  ;;  %v303_v58 = vsel %vm295_vm8, %v285_v53, %v299_v55 }
 0x1a4   :  { %456 = vmatpush3.msra.mxu0 %v303_v58 }
 0x1a5   :  { %457 = vmatprep.subr.mxu0 %v493_v40 }
 0x1a6   :  { %458 = vmatpush3.msra.mxu0 %v302_v59 }
 0x1a7   :  { %459 = vmatprep.subr.mxu0 %v493_v40 }
 0x1a8   :  { %460 = vmatpush3.msra.mxu0 %v301_v61 }
 0x1a9   :  { %462 = vmatmul.mubr.msk.f32.vlgmr.msra.gmra.mxu0 %vm195_vm1, %v305_v60 }
 0x269   :  { %v381_v63 = vpop.f32.mrf.mxu0 }
 0x26a   :  { %v382_v0 = vadd.f32 %v381_v63, %v310_v62 }
 0x26b   :  { %v463_v1 = vpop.f32.mrf.mxu0 }
 0x26c   :  { %386 = vst.msk [vmem:[#allocation2] sm:$0xff] %vm385_vm11, %v382_v0 }
 0x26d   :  { %481 = shalt.err (!%p478_p4)
}
 0x26e   :  { %396 = dma.vmem_to_hbm [thread:$0]  %s394_s12, 128, %s615_s7, [#allocation3]  }
 0x26f   :  { %490 = dma.done.wait [#allocation3], 128  }
 0x270   :  { %491 = vsyncadd [#allocation3], 4294967168 }
 0x271   :  { %400 = vsyncpa [#allocation3], 1 }

</bundles_post_ra>
